<compile_context>
chip_gen: v7x
topology: tpu7x:2x2x1
jax: 0.10.0
libtpu: 0.0.40
codegen_flags: <defaults>
</compile_context>

<pallas_src>
import functools

import jax
import jax.numpy as jnp
from jax.experimental import pallas as pl
from jax.experimental.pallas import tpu as pltpu


def _vmem_capacity_bytes():
    """Generation-aware VMEM capacity; conservative (v7x, 64 MiB) fallback."""
    try:
        info = pltpu.get_tpu_info()
        cap = int(getattr(info, "vmem_capacity_bytes", 0) or 0)
        if cap > 0:
            return cap
    except Exception:
        pass
    return 64 * 1024 * 1024


def _round_up(x, m):
    return ((x + m - 1) // m) * m


def _pick_tiles(B, nb, in_dim, out_dim, x_bytes, w_bytes, out_bytes,
                tile_cap, budget):
    """Pick (tb, tn) so the double-buffered tile footprint fits `budget`."""
    tb = B if B <= tile_cap else tile_cap          # tile_cap is a multiple of 8
    tn = out_dim if out_dim <= tile_cap else tile_cap  # ... and of 128
    tb_min = min(tb, 8)
    tn_min = min(tn, 128)

    def footprint(tb_, tn_):
        x_tile = tb_ * nb * in_dim * x_bytes
        w_tile = nb * in_dim * tn_ * w_bytes
        b_tile = nb * tn_ * 4
        o_tile = nb * tb_ * tn_ * out_bytes
        return 2 * (x_tile + w_tile + b_tile + o_tile)   # double-buffered

    while footprint(tb, tn) > budget:
        x_tile = tb * nb * in_dim * x_bytes
        w_tile = nb * in_dim * tn * w_bytes
        if x_tile >= w_tile and tb > tb_min:
            tb = max(tb_min, _round_up(tb // 2, 8))
        elif tn > tn_min:
            tn = max(tn_min, _round_up(tn // 2, 128))
        elif tb > tb_min:
            tb = max(tb_min, _round_up(tb // 2, 8))
        else:
            # TODO(synk): extreme in_dim -> add a K grid axis + f32 accumulator.
            break
    return tb, tn


def _triple_linear_kernel(nb, in_dim, x_ref, w_ref, b_ref, o_ref):
    # x_ref : (tb, nb*in_dim)   activation slab (branches lane-concatenated)
    # w_ref : (nb, in_dim, tn)  pre-transposed weights -> natural (M,K)@(K,N)
    # b_ref : (nb, 1, tn)       bias tile (resident)
    # o_ref : (nb, tb, tn)      branch-major output; each store is dense (tb,tn)
    for br in range(nb):  # static unroll: all branches in one grid step
        x_br = x_ref[:, br * in_dim:(br + 1) * in_dim]            # (tb, in_dim)
        acc = jnp.dot(x_br, w_ref[br],
                      preferred_element_type=jnp.float32)         # MXU, f32 acc
        acc = acc + b_ref[br].astype(jnp.float32)                 # (1, tn) bcast
        o_ref[br] = acc.astype(o_ref.dtype)


def prepare_triple_linear_params(weights, biases, dtype=None):
    """One-off param prep (hoist to model init, not per step).

    weights: (nb, out_dim, in_dim) torch nn.Linear layout -> (nb, in_dim, out_dim)
    biases : (nb, out_dim)                                -> (nb, 1, out_dim)
    """
    nb, out_dim, _ = weights.shape
    w_t = jnp.transpose(weights, (0, 2, 1))
    b_r = biases.reshape(nb, 1, out_dim)
    if dtype is not None:
        w_t = w_t.astype(dtype)
    return w_t, b_r


def _run_branches(x_slab, w_t, b_r):
    """x_slab: (B, nb*in_dim); w_t: (nb, in_dim, out_dim); b_r: (nb, 1, out_dim).

    Returns a single branch-major (nb, B, out_dim) array."""
    nb, in_dim, out_dim = w_t.shape
    B = x_slab.shape[0]

    x_bytes = x_slab.dtype.itemsize
    w_bytes = w_t.dtype.itemsize
    out_dtype = x_slab.dtype
    out_bytes = jnp.dtype(out_dtype).itemsize

    vmem_cap = _vmem_capacity_bytes()
    budget = (3 * vmem_cap) // 4                     # ~96 MiB on v5e/v6e, ~48 MiB on v7x
    tile_cap = 512 if vmem_cap >= 96 * 1024 * 1024 else 256
    tb, tn = _pick_tiles(B, nb, in_dim, out_dim, x_bytes, w_bytes, out_bytes,
                         tile_cap, budget)

    b_tiles = pl.cdiv(B, tb)
    n_tiles = pl.cdiv(out_dim, tn)

    x_total = B * nb * in_dim * x_bytes
    w_total = nb * in_dim * out_dim * w_bytes
    o_total = nb * B * out_dim * out_bytes
    # Operand keyed to the OUTER grid axis is fetched once; the other re-streams
    # once per outer tile. Pick the order minimizing total HBM traffic.
    traffic_batch_outer = x_total + b_tiles * w_total     # grid (b, n)
    traffic_out_outer = w_total + n_tiles * x_total       # grid (n, b)
    batch_outer = traffic_batch_outer < traffic_out_outer

    if batch_outer:
        grid = (b_tiles, n_tiles)
        x_idx = lambda b, n: (b, 0)
        w_idx = lambda b, n: (0, 0, n)
        s_idx = lambda b, n: (0, 0, n)
        o_idx = lambda b, n: (0, b, n)
    else:
        grid = (n_tiles, b_tiles)
        x_idx = lambda n, b: (b, 0)
        w_idx = lambda n, b: (0, 0, n)
        s_idx = lambda n, b: (0, 0, n)
        o_idx = lambda n, b: (0, b, n)

    cost = pl.CostEstimate(
        flops=2 * B * nb * in_dim * out_dim,
        transcendentals=0,
        bytes_accessed=x_total + w_total + nb * out_dim * 4 + o_total,
    )

    kernel = functools.partial(_triple_linear_kernel, nb, in_dim)

    return pl.pallas_call(
        kernel,
        out_shape=jax.ShapeDtypeStruct((nb, B, out_dim), out_dtype),
        grid=grid,
        in_specs=[
            # activation slab: depends on the batch tile only
            pl.BlockSpec((tb, nb * in_dim), x_idx),
            # pre-transposed weight tile: depends on the out-dim tile only
            pl.BlockSpec((nb, in_dim, tn), w_idx),
            # bias tile: depends on the out-dim tile only
            pl.BlockSpec((nb, 1, tn), s_idx),
        ],
        out_specs=pl.BlockSpec((nb, tb, tn), o_idx),
        compiler_params=pltpu.CompilerParams(
            dimension_semantics=("parallel", "parallel"),   # no accumulation axis
            vmem_limit_bytes=int(budget),
        ),
        cost_estimate=cost,
    )(x_slab, w_t, b_r)


def triple_linear_head(joint_embedding, weights, biases, training=True):
    """Pallas implementation of TripleLinearHead.forward.

    joint_embedding: training -> (B, 3, in_dim); inference -> (B, in_dim)
    weights: (3, out_dim, in_dim)  (torch nn.Linear convention)
    biases:  (3, out_dim)
    """
    if training:
        nb = weights.shape[0]
        in_dim = weights.shape[2]
        B = joint_embedding.shape[0]
        x_slab = joint_embedding.reshape(B, nb * in_dim)       # free contiguous view
        w_t, b_r = prepare_triple_linear_params(weights, biases)
        out = _run_branches(x_slab, w_t, b_r)                  # (3, B, out_dim)
        # Only extra pass is over the small logits tensor; consumers that accept
        # branch-major output can use `out` directly and skip this transpose.
        return jnp.transpose(out, (1, 0, 2))                   # (B, 3, out_dim)
    else:
        w_t, b_r = prepare_triple_linear_params(weights[0:1], biases[0:1])
        out = _run_branches(joint_embedding, w_t, b_r)         # (1, B, out_dim)
        return out[0]                                          # (B, out_dim)


def _ref_forward(joint_embedding, weights, biases, training=True):
    if training:
        feats = [
            joint_embedding[:, i] @ weights[i].T + biases[i] for i in range(3)
        ]
        return jnp.stack(feats, axis=1)
    else:
        return joint_embedding @ weights[0].T + biases[0]


if __name__ == "__main__":
    B, in_dim, out_dim = 8, 32, 16

    key = jax.random.PRNGKey(0)
    kx, kw, kb = jax.random.split(key, 3)

    # torch nn.Linear parameter shapes: (out, in) weight, (out,) bias per branch
    weights = jax.random.normal(kw, (3, out_dim, in_dim), dtype=jnp.float32) * 0.1
    biases = jax.random.normal(kb, (3, out_dim), dtype=jnp.float32) * 0.1
    x_train = jax.random.normal(kx, (B, 3, in_dim), dtype=jnp.float32)

    # --- exact f32 path, training mode: (B, 3, in_dim) -> (B, 3, out_dim) ---
    out_train = jax.block_until_ready(
        triple_linear_head(x_train, weights, biases, training=True))
    ref_train = _ref_forward(x_train, weights, biases, training=True)
    assert out_train.shape == (B, 3, out_dim)
    assert jnp.allclose(out_train, ref_train, atol=1e-5, rtol=1e-5)

    # --- exact f32 path, inference mode: (B, in_dim) -> (B, out_dim) ---
    x_eval = x_train[:, 0]
    out_eval = jax.block_until_ready(
        triple_linear_head(x_eval, weights, biases, training=False))
    ref_eval = _ref_forward(x_eval, weights, biases, training=False)
    assert out_eval.shape == (B, out_dim)
    assert jnp.allclose(out_eval, ref_eval, atol=1e-5, rtol=1e-5)

    # --- bf16 fast path (bf16 MXU operands, f32 accumulate, bf16 outputs) ---
    xb = x_train.astype(jnp.bfloat16)
    wb = weights.astype(jnp.bfloat16)
    bb = biases.astype(jnp.bfloat16)
    out_bf = jax.block_until_ready(triple_linear_head(xb, wb, bb, training=True))
    ref_bf = _ref_forward(xb.astype(jnp.float32), wb.astype(jnp.float32),
                          bb.astype(jnp.float32), training=True)
    assert out_bf.dtype == jnp.bfloat16
    assert jnp.allclose(out_bf.astype(jnp.float32), ref_bf, atol=3e-2, rtol=3e-2)

    print("KERNEL_OK")
</pallas_src>

<mosaic_0001>
module attributes {stable_mosaic.version = 11 : i64} {
  func.func @_triple_linear_kernel(%arg0: i32, %arg1: i32, %arg2: memref<8x96xf32, #tpu.memory_space<vmem>>, %arg3: memref<3x32x16xf32, #tpu.memory_space<vmem>>, %arg4: memref<3x1x16xf32, #tpu.memory_space<vmem>>, %arg5: memref<3x8x16xf32, #tpu.memory_space<vmem>>) attributes {dimension_semantics = [#tpu.dimension_semantics<parallel>, #tpu.dimension_semantics<parallel>], iteration_bounds = array<i64: 1, 1>, scalar_prefetch = 0 : i64, scratch_operands = 0 : i64, tpu.core_type = #tpu.core_type<tc>, window_params = [{transform_indices = @transform_0, window_bounds = array<i64: 8, 96>}, {transform_indices = @transform_1, window_bounds = array<i64: 3, 32, 16>}, {transform_indices = @transform_2, window_bounds = array<i64: 3, 1, 16>}, {transform_indices = @transform_3, window_bounds = array<i64: 3, 8, 16>}]} {
    %c0 = arith.constant 0 : index
    %c0_0 = arith.constant 0 : index
    %0 = vector.load %arg2[%c0, %c0_0] : memref<8x96xf32, #tpu.memory_space<vmem>>, vector<8x32xf32>
    %c0_1 = arith.constant 0 : index
    %c0_2 = arith.constant 0 : index
    %c0_3 = arith.constant 0 : index
    %1 = vector.load %arg3[%c0_1, %c0_2, %c0_3] : memref<3x32x16xf32, #tpu.memory_space<vmem>>, vector<1x32x16xf32>
    %2 = vector.shape_cast %1 : vector<1x32x16xf32> to vector<32x16xf32>
    %cst = arith.constant dense<0.000000e+00> : vector<8x16xf32>
    %3 = tpu.matmul %0, %2, %cst {dimension_numbers = #tpu.dot_dimension_numbers<[1], [0], [0], [1], [0, 0, 1, 1], [], []>} : vector<8x32xf32>, vector<32x16xf32>, vector<8x16xf32> -> vector<8x16xf32>
    %c0_4 = arith.constant 0 : index
    %c0_5 = arith.constant 0 : index
    %c0_6 = arith.constant 0 : index
    %4 = vector.load %arg4[%c0_4, %c0_5, %c0_6] : memref<3x1x16xf32, #tpu.memory_space<vmem>>, vector<1x1x16xf32>
    %5 = vector.shape_cast %4 : vector<1x1x16xf32> to vector<1x16xf32>
    %6 = vector.broadcast %5 : vector<1x16xf32> to vector<8x16xf32>
    %7 = arith.addf %3, %6 : vector<8x16xf32>
    %c0_7 = arith.constant 0 : index
    %c0_8 = arith.constant 0 : index
    %c0_9 = arith.constant 0 : index
    %8 = vector.load %arg5[%c0_7, %c0_8, %c0_9] : memref<3x8x16xf32, #tpu.memory_space<vmem>>, vector<1x8x16xf32>
    %9 = vector.shape_cast %8 : vector<1x8x16xf32> to vector<8x16xf32>
    %10 = vector.shape_cast %7 : vector<8x16xf32> to vector<1x8x16xf32>
    tpu.vector_store %arg5[%c0_7, %c0_8, %c0_9], %10 {strides = array<i32>} : memref<3x8x16xf32, #tpu.memory_space<vmem>>, vector<1x8x16xf32>,
    %c0_10 = arith.constant 0 : index
    %c32 = arith.constant 32 : index
    %11 = vector.load %arg2[%c0_10, %c32] : memref<8x96xf32, #tpu.memory_space<vmem>>, vector<8x32xf32>
    %c1 = arith.constant 1 : index
    %c0_11 = arith.constant 0 : index
    %c0_12 = arith.constant 0 : index
    %12 = vector.load %arg3[%c1, %c0_11, %c0_12] : memref<3x32x16xf32, #tpu.memory_space<vmem>>, vector<1x32x16xf32>
    %13 = vector.shape_cast %12 : vector<1x32x16xf32> to vector<32x16xf32>
    %cst_13 = arith.constant dense<0.000000e+00> : vector<8x16xf32>
    %14 = tpu.matmul %11, %13, %cst_13 {dimension_numbers = #tpu.dot_dimension_numbers<[1], [0], [0], [1], [0, 0, 1, 1], [], []>} : vector<8x32xf32>, vector<32x16xf32>, vector<8x16xf32> -> vector<8x16xf32>
    %c1_14 = arith.constant 1 : index
    %c0_15 = arith.constant 0 : index
    %c0_16 = arith.constant 0 : index
    %15 = vector.load %arg4[%c1_14, %c0_15, %c0_16] : memref<3x1x16xf32, #tpu.memory_space<vmem>>, vector<1x1x16xf32>
    %16 = vector.shape_cast %15 : vector<1x1x16xf32> to vector<1x16xf32>
    %17 = vector.broadcast %16 : vector<1x16xf32> to vector<8x16xf32>
    %18 = arith.addf %14, %17 : vector<8x16xf32>
    %c1_17 = arith.constant 1 : index
    %c0_18 = arith.constant 0 : index
    %c0_19 = arith.constant 0 : index
    %19 = vector.load %arg5[%c1_17, %c0_18, %c0_19] : memref<3x8x16xf32, #tpu.memory_space<vmem>>, vector<1x8x16xf32>
    %20 = vector.shape_cast %19 : vector<1x8x16xf32> to vector<8x16xf32>
    %21 = vector.shape_cast %18 : vector<8x16xf32> to vector<1x8x16xf32>
    tpu.vector_store %arg5[%c1_17, %c0_18, %c0_19], %21 {strides = array<i32>} : memref<3x8x16xf32, #tpu.memory_space<vmem>>, vector<1x8x16xf32>,
    %c0_20 = arith.constant 0 : index
    %c64 = arith.constant 64 : index
    %22 = vector.load %arg2[%c0_20, %c64] : memref<8x96xf32, #tpu.memory_space<vmem>>, vector<8x32xf32>
    %c2 = arith.constant 2 : index
    %c0_21 = arith.constant 0 : index
    %c0_22 = arith.constant 0 : index
    %23 = vector.load %arg3[%c2, %c0_21, %c0_22] : memref<3x32x16xf32, #tpu.memory_space<vmem>>, vector<1x32x16xf32>
    %24 = vector.shape_cast %23 : vector<1x32x16xf32> to vector<32x16xf32>
    %cst_23 = arith.constant dense<0.000000e+00> : vector<8x16xf32>
    %25 = tpu.matmul %22, %24, %cst_23 {dimension_numbers = #tpu.dot_dimension_numbers<[1], [0], [0], [1], [0, 0, 1, 1], [], []>} : vector<8x32xf32>, vector<32x16xf32>, vector<8x16xf32> -> vector<8x16xf32>
    %c2_24 = arith.constant 2 : index
    %c0_25 = arith.constant 0 : index
    %c0_26 = arith.constant 0 : index
    %26 = vector.load %arg4[%c2_24, %c0_25, %c0_26] : memref<3x1x16xf32, #tpu.memory_space<vmem>>, vector<1x1x16xf32>
    %27 = vector.shape_cast %26 : vector<1x1x16xf32> to vector<1x16xf32>
    %28 = vector.broadcast %27 : vector<1x16xf32> to vector<8x16xf32>
    %29 = arith.addf %25, %28 : vector<8x16xf32>
    %c2_27 = arith.constant 2 : index
    %c0_28 = arith.constant 0 : index
    %c0_29 = arith.constant 0 : index
    %30 = vector.load %arg5[%c2_27, %c0_28, %c0_29] : memref<3x8x16xf32, #tpu.memory_space<vmem>>, vector<1x8x16xf32>
    %31 = vector.shape_cast %30 : vector<1x8x16xf32> to vector<8x16xf32>
    %32 = vector.shape_cast %29 : vector<8x16xf32> to vector<1x8x16xf32>
    tpu.vector_store %arg5[%c2_27, %c0_28, %c0_29], %32 {strides = array<i32>} : memref<3x8x16xf32, #tpu.memory_space<vmem>>, vector<1x8x16xf32>,
    return
  }
  func.func @transform_0(%arg0: i32, %arg1: i32) -> (i32, i32) {
    %c0_i32 = arith.constant 0 : i32
    %c0_i32_0 = arith.constant 0 : i32
    return %arg1, %c0_i32 : i32, i32
  }
  func.func @transform_1(%arg0: i32, %arg1: i32) -> (i32, i32, i32) {
    %c0_i32 = arith.constant 0 : i32
    %c0_i32_0 = arith.constant 0 : i32
    %c0_i32_1 = arith.constant 0 : i32
    return %c0_i32, %c0_i32_0, %arg0 : i32, i32, i32
  }
  func.func @transform_2(%arg0: i32, %arg1: i32) -> (i32, i32, i32) {
    %c0_i32 = arith.constant 0 : i32
    %c0_i32_0 = arith.constant 0 : i32
    %c0_i32_1 = arith.constant 0 : i32
    return %c0_i32, %c0_i32_0, %arg0 : i32, i32, i32
  }
  func.func @transform_3(%arg0: i32, %arg1: i32) -> (i32, i32, i32) {
    %c0_i32 = arith.constant 0 : i32
    %c0_i32_0 = arith.constant 0 : i32
    return %c0_i32, %arg1, %arg0 : i32, i32, i32
  }
}

</mosaic_0001>

<bundles_post_ra>
// kernel: tpu_custom_call.1
= control target key start
LH: loop header
LB: loop body
LE: loop exit
PB: predicated region body
PF: predicated region fallthrough
CT: control target
= control target key end

     0   :  { %s415_s18 = smov 96   ;;  %v416_v3 = vmov 0.0|0.0   ;;  %vm417_vm0 = vmmov 0   ;;  %v418_v9 = vmov 0.0   ;;  %s509_s0 = inlined_call_operand.vmem [shape: f32[8,96], index: 0, kind: input, shape index: {}]   ;;  %s510_s1 = inlined_call_operand.vmem [shape: f32[3,32,16], index: 1, kind: input, shape index: {}]   ;;  %s511_s2 = inlined_call_operand.vmem [shape: f32[3,1,16], index: 2, kind: input, shape index: {}]   ;;  %s512_s3 = inlined_call_operand.hbm [shape: f32[3,8,16], index: 3, kind: output, shape index: {}]  }
   0x1   :  { %v103_v0 = vld [vmem:[%s509_s0] sm:$0xff]  ;;  %v17_v2 = vld [vmem:[%s510_s1 + $0x8] sm:$0xff]  ;;  %365 = vmatprep.subr.bf16.mxu0 %v416_v3  ;;  %v18_v5 = vld [vmem:[%s510_s1 + $0x10] sm:$0xff]  ;;  %371 = vmatprep.subr.bf16.mxu1 %v416_v3 }
   0x2   :  { %v16_v1 = vld [vmem:[%s510_s1] sm:$0xff]  ;;  %118 = vrot.lane.b32.xlu0 %v103_v0, %s415_s18  ;;  %v19_v6 = vld [vmem:[%s510_s1 + $0x18] sm:$0xff]  ;;  %v304_v8 = vld [vmem:[%s510_s1 + $0x28] sm:$0xff]  ;;  %340 = vmatprep.mubr.msk.f32.mxu0 %vm417_vm0, %v418_v9 }
   0x3   :  { %v366_v4 = vpack.c.bf16 %v17_v2, %v16_v1  ;;  %v303_v7 = vld [vmem:[%s510_s1 + $0x20] sm:$0xff]  ;;  %v305_v10 = vld [vmem:[%s510_s1 + $0x30] sm:$0xff]  ;;  %v306_v11 = vld [vmem:[%s510_s1 + $0x38] sm:$0xff]  ;;  %v369_v12 = vpack.c.bf16 %v19_v6, %v18_v5  ;;  %351 = vmatprep.mubr.msk.f32.mxu1 %vm417_vm0, %v418_v9 }
   0x4   :  { %v372_v13 = vpack.c.bf16 %v304_v8, %v303_v7  ;;  %v310_v14 = vld [vmem:[%s510_s1 + $0x40] sm:$0xff]  ;;  %v311_v15 = vld [vmem:[%s510_s1 + $0x48] sm:$0xff] }
   0x5   :  { %367 = vmatpush3.bf16.msra.mxu0 %v366_v4 }
   0x6   :  { %368 = vmatprep.subr.bf16.mxu0 %v416_v3 }
   0x7   :  { %8 = vsyncpa [#allocation3], 0  ;;  %s419_s7 = smov 64   ;;  %373 = vmatpush3.bf16.msra.mxu1 %v372_v13  ;;  %v375_v16 = vpack.c.bf16 %v306_v11, %v305_v10  ;;  %vm27_vm1 = vcmask 261120   ;;  %v378_v17 = vpack.c.bf16 %v311_v15, %v310_v14  ;;  %v312_v18 = vld [vmem:[%s510_s1 + $0x50] sm:$0xff]  ;;  %v313_v19 = vld [vmem:[%s510_s1 + $0x58] sm:$0xff] }
   0x8   :  { %209 = vrot.lane.b32.xlu0 %v103_v0, %s419_s7  ;;  %374 = vmatprep.subr.bf16.mxu1 %v416_v3  ;;  %v381_v20 = vpack.c.bf16 %v313_v19, %v312_v18  ;;  %v301_v23 = vld [vmem:[%s511_s2] ss:$0 sm:$0xff]  ;;  %vm101_vm2 = vcmask 130048   ;;  %v308_v27 = vld [vmem:[%s511_s2 + $0x1] ss:$0 sm:$0xff]  ;;  %s420_s15 = smov [#allocation2]  }
   0x9   :  { %370 = vmatpush3.bf16.msra.mxu0 %v369_v12  ;;  %s290_s16 = sshll.u32 %s420_s15, 4  ;;  %v315_v31 = vld [vmem:[%s511_s2 + $0x2] ss:$0 sm:$0xff]  ;;  %s291_s16 = int_to_ptr.vmem [resolvable:$true] %s290_s16 }
   0xa   :  { %377 = vmatprep.subr.bf16.mxu0 %v416_v3  ;;  %s391_s19 = scalar_lea.vmem %s291_s16, 384  ;;  %p396_p1 = scmp.lt.s32.totalorder %s291_s16, %s291_s16 }
   0xb   :  { %376 = vmatpush3.bf16.msra.mxu1 %v375_v16  ;;  %p392_p0 = scmp.ne.s32.totalorder %s291_s16, %s391_s19  ;;  %p397_p2 = scmp.lt.s32.totalorder %s391_s19, %s391_s19 }
   0xc   :  { %341 = vmatmul.mubr.msk.f32.vlgmr.msra.gmra.mrb[0].mxu0 %vm27_vm1, %v103_v0 }
   0xd   :  { %379 = vmatpush3.bf16.msra.mxu0 %v378_v17  ;;  %362 = vmatprep.mubr.msk.f32.mxu0 %vm417_vm0, %v418_v9  ;;  %p398_p3 = por %p397_p2, %p396_p1 }
   0xe   :  { %380 = vmatprep.subr.bf16.mxu0 %v416_v3 }
   0xf   :  { %p399_p4 = pnand %p398_p3, %p392_p0 }
  0x11   :  { %382 = vmatpush3.bf16.msra.mxu0 %v381_v20 }
  0x74   :  { %v119_v21 = vpop.permute.xlu0 %118 }
  0x75   :  { %352 = vmatmul.mubr.msk.f32.vlgmr.msra.gmra.mrb[0].mxu1 %vm27_vm1, %v119_v21 }
  0x7a   :  { %v210_v22 = vpop.permute.xlu0 %209 }
  0x7b   :  { %363 = vmatmul.mubr.msk.f32.vlgmr.msra.gmra.mrb[2].mxu0 %vm27_vm1, %v210_v22 }
  0xdf   :  { %v97_v24 = vpop.f32.mrb[0].mxu0 }
  0xe0   :  { %v98_v25 = vadd.f32 %v301_v23, %v97_v24  ;;  %v342_v26 = vpop.f32.mrb[1].mxu0 }
  0xe2   :  { %102 = vst.msk [vmem:[#allocation2] sm:$0xff] %vm101_vm2, %v98_v25 }
 0x148   :  { %v188_v28 = vpop.f32.mrb[0].mxu1 }
 0x149   :  { %v189_v29 = vadd.f32 %v308_v27, %v188_v28  ;;  %v353_v30 = vpop.f32.mrb[1].mxu1 }
 0x14b   :  { %193 = vst.msk [vmem:[#allocation2 + $0x8] sm:$0xff] %vm101_vm2, %v189_v29 }
 0x14e   :  { %v279_v32 = vpop.f32.mrb[2].mxu0 }
 0x14f   :  { %v280_v33 = vadd.f32 %v315_v31, %v279_v32  ;;  %v364_v34 = vpop.f32.mrb[3].mxu0 }
 0x151   :  { %284 = vst.msk [vmem:[#allocation2 + $0x10] sm:$0xff] %vm101_vm2, %v280_v33 }
 0x152   :  { %402 = shalt.err (!%p399_p4)
}
 0x153   :  { %s403_s22 = scalar_lea.hbm %s512_s3, 384 }
 0x154   :  { %p404_p5 = scmp.ne.s32.totalorder %s512_s3, %s403_s22  ;;  %p407_p6 = scmp.lt.u32.totalorder %s403_s22, %s512_s3 }
 0x156   :  { %p409_p7 = pnand %p407_p6, %p404_p5 }
 0x158   :  { %412 = shalt.err (!%p409_p7)
}
 0x159   :  { %s421_s25 = smov 128   ;;  %s422_s26 = smov 8  }
 0x15a   :  { %296 = dma.vmem_to_hbm [thread:$0]  %s291_s16, 384, %s512_s3, [#allocation3], %s421_s25, %s421_s25, %s422_s26  }
 0x15b   :  { %413 = dma.done.wait [#allocation3], 384  }
 0x15c   :  { %414 = vsyncadd [#allocation3], 4294966912 }
 0x15d   :  { %300 = vsyncpa [#allocation3], 1 }

</bundles_post_ra>
